<compile_context>
chip_gen: v7x
topology: tpu7x:2x2x1
jax: 0.10.0
libtpu: 0.0.40
codegen_flags: <defaults>
</compile_context>

<pallas_src>
import functools

import jax
import jax.numpy as jnp
from jax.experimental import pallas as pl
from jax.experimental.pallas import tpu as pltpu


def _attention_kernel(lens_ref, x_ref, w1_ref, w2_ref, o_ref, *, matmul_dtype):
    # lens_ref: (b_blk, 1, 1) int32   per-row valid lengths
    # x_ref:    (b_blk, S_pad, H)     encoder hidden states (padded along seq)
    # w1_ref:   (H, A)                first Linear weight (in x out, no bias)
    # w2_ref:   (A, K)                second Linear weight (in x out), K = hops
    # o_ref:    (b_blk, K, S_pad)     attention weights, lane-dense over S_pad
    b_blk, s_pad, h_dim = x_ref.shape
    k_hops = w2_ref.shape[1]

    # Fuse batch rows into one big MXU tile: (b_blk*S_pad, H). The merge of the
    # two leading dims is layout-free because S_pad is a multiple of 8.
    x = x_ref[...].reshape(b_blk * s_pad, h_dim)

    hid = jnp.tanh(
        jnp.dot(x.astype(matmul_dtype), w1_ref[...].astype(matmul_dtype),
                preferred_element_type=jnp.float32))           # (b_blk*S_pad, A) f32
    scores = jnp.dot(hid.astype(matmul_dtype), w2_ref[...].astype(matmul_dtype),
                     preferred_element_type=jnp.float32)        # (b_blk*S_pad, K) f32

    # (b_blk*S_pad, K) -> (b_blk, K, S_pad): the softmax reduction then runs
    # along the lane axis and the final store is a straight lane-dense write.
    scores = scores.reshape(b_blk, s_pad, k_hops)
    scores = jnp.transpose(scores, (0, 2, 1))                   # (b_blk, K, S_pad)

    # Mask positions >= length (this also masks the S -> S_pad padding).
    idx = jax.lax.broadcasted_iota(jnp.int32, (b_blk, k_hops, s_pad), 2)
    mask = idx >= lens_ref[...]                                 # (b_blk,1,1) broadcast
    scores = jnp.where(mask, jnp.float32(-1e30), scores)

    # Softmax over the sequence (last/lane) axis, f32 throughout.
    m = jnp.max(scores, axis=-1, keepdims=True)
    e = jnp.exp(scores - m)
    denom = jnp.sum(e, axis=-1, keepdims=True)
    weights = e * pl.reciprocal(denom, approx=True)             # EUP, off the VPU path

    o_ref[...] = weights.astype(o_ref.dtype)


def attention_forward(encoder_hidden, lengths, w1, w2, *,
                      batch_block=None, matmul_dtype=jnp.bfloat16):
    """encoder_hidden: (B, S, H) f32; lengths: (B,) int; w1: (H, A); w2: (A, K)
       -> (B, K, S) f32 attention weights (matches PyTorch weights.transpose(1,2))."""
    B, S, H = encoder_hidden.shape
    A = w1.shape[1]
    K = w2.shape[1]

    # Pad the sequence axis to a multiple of 128 so the output block is
    # lane-dense and the fused matmul M dim is MXU-friendly. Padded positions
    # are masked inside the kernel (idx >= length), so results are unchanged.
    # NOTE: for the degenerate lengths==0 case the (padded) softmax is uniform
    # over S_pad rather than S; the reference/PyTorch behavior there is already
    # degenerate (uniform over invalid positions).
    LANE = 128
    S_pad = ((S + LANE - 1) // LANE) * LANE
    if S_pad != S:
        encoder_hidden = jnp.pad(
            encoder_hidden, ((0, 0), (0, S_pad - S), (0, 0)))

    # Choose how many batch rows to fuse per grid step: as many as fit with
    # each x block <= ~16 MiB (safe under v7x's 64 MiB VMEM with double
    # buffering), and a divisor of B so blocks tile the batch exactly.
    itemsize = encoder_hidden.dtype.itemsize
    row_bytes = S_pad * H * itemsize
    max_x_block_bytes = 16 * 1024 * 1024
    cap = max(1, max_x_block_bytes // row_bytes)
    if batch_block is not None:
        cap = min(cap, batch_block)
    b_blk = 1
    for d in range(1, B + 1):
        if B % d == 0 and d <= cap:
            b_blk = d
    grid = (B // b_blk,)

    lens3 = lengths.astype(jnp.int32).reshape(B, 1, 1)

    # Explicit VMEM budget: 2x double-buffered x + 2x output block + weights.
    x_block_bytes = b_blk * row_bytes
    out_block_bytes = b_blk * K * S_pad * 4
    w_bytes = (H * A + A * K) * 4
    needed = 2 * (x_block_bytes + out_block_bytes) + 2 * w_bytes + (4 << 20)
    vmem_limit = int(min(max(needed, 32 * 1024 * 1024), 48 * 1024 * 1024))

    kernel = functools.partial(_attention_kernel, matmul_dtype=matmul_dtype)

    out_padded = pl.pallas_call(
        kernel,
        out_shape=jax.ShapeDtypeStruct((B, K, S_pad), jnp.float32),
        grid_spec=pltpu.PrefetchScalarGridSpec(
            num_scalar_prefetch=0,
            grid=grid,
            in_specs=[
                pl.BlockSpec((b_blk, 1, 1), lambda i: (i, 0, 0)),      # lengths
                pl.BlockSpec((b_blk, S_pad, H), lambda i: (i, 0, 0)),  # x
                pl.BlockSpec((H, A), lambda i: (0, 0)),                # w1
                pl.BlockSpec((A, K), lambda i: (0, 0)),                # w2
            ],
            out_specs=pl.BlockSpec((b_blk, K, S_pad), lambda i: (i, 0, 0)),
        ),
        compiler_params=pltpu.CompilerParams(
            dimension_semantics=("parallel",),
            vmem_limit_bytes=vmem_limit,
        ),
    )(lens3, encoder_hidden, w1, w2)

    # TODO(synk): for very large S*H per block, add an H-reduction grid axis
    # ("arbitrary") with a VMEM f32 accumulator instead of shrinking b_blk.
    if S_pad == S:
        return out_padded
    return out_padded[:, :, :S]


def attention_reference(encoder_hidden, lengths, w1, w2):
    """Pure-JAX reference mirroring the PyTorch forward."""
    scores = jnp.tanh(encoder_hidden @ w1) @ w2              # (B, S, K)
    B, S, K = scores.shape
    idx = jnp.arange(S)[None, :]                             # (1, S)
    mask = idx >= lengths[:, None]                            # (B, S)
    scores = jnp.where(mask[:, :, None], -1e30, scores)
    weights = jax.nn.softmax(scores, axis=1)
    return jnp.transpose(weights, (0, 2, 1))                  # (B, K, S)


if __name__ == "__main__":
    # Small shapes consistent with the module.
    B, S = 4, 8
    num_encoder_hidden = 32
    num_attention_hidden = 16
    num_hops = 4

    key = jax.random.PRNGKey(0)
    k_x, k_w1, k_w2 = jax.random.split(key, 3)

    encoder_hidden = jax.random.normal(
        k_x, (B, S, num_encoder_hidden), dtype=jnp.float32)
    # PyTorch Linear stores (out, in); we keep the (in, out) orientation so the
    # kernel does x @ W directly (no bias, matching the module).
    w1 = jax.random.normal(
        k_w1, (num_encoder_hidden, num_attention_hidden),
        dtype=jnp.float32) * 0.1
    w2 = jax.random.normal(
        k_w2, (num_attention_hidden, num_hops), dtype=jnp.float32) * 0.1
    lengths = jnp.array([5, 8, 3, 1], dtype=jnp.int32)

    ref = attention_reference(encoder_hidden, lengths, w1, w2)

    # f32 MXU path (batch_block=2 -> 2 batch rows fused per grid step, grid=(2,)).
    out_f32 = attention_forward(encoder_hidden, lengths, w1, w2,
                                batch_block=2, matmul_dtype=jnp.float32)
    jax.block_until_ready(out_f32)
    assert out_f32.shape == (B, num_hops, S)
    assert jnp.allclose(out_f32, ref, atol=1e-3, rtol=1e-3)

    # bf16 MXU operands (recommended default on v6e/v7x); looser tolerance.
    out_bf16 = attention_forward(encoder_hidden, lengths, w1, w2,
                                 batch_block=2, matmul_dtype=jnp.bfloat16)
    jax.block_until_ready(out_bf16)
    assert out_bf16.shape == (B, num_hops, S)
    assert jnp.allclose(out_bf16, ref, atol=2e-2, rtol=2e-2)

    print("KERNEL_OK")
</pallas_src>

<mosaic_0001>
module attributes {stable_mosaic.version = 11 : i64} {
  func.func @_attention_kernel(%arg0: i32, %arg1: memref<2x1x1xi32, #tpu.memory_space<vmem>>, %arg2: memref<2x128x32xf32, #tpu.memory_space<vmem>>, %arg3: memref<32x16xf32, #tpu.memory_space<vmem>>, %arg4: memref<16x4xf32, #tpu.memory_space<vmem>>, %arg5: memref<2x4x128xf32, #tpu.memory_space<vmem>>) attributes {dimension_semantics = [#tpu.dimension_semantics<parallel>], iteration_bounds = array<i64: 2>, scalar_prefetch = 0 : i64, scratch_operands = 0 : i64, tpu.core_type = #tpu.core_type<tc>, window_params = [{transform_indices = @transform_0, window_bounds = array<i64: 2, 1, 1>}, {transform_indices = @transform_1, window_bounds = array<i64: 2, 128, 32>}, {pipeline_mode = #tpu.pipeline_mode<synchronous>, transform_indices = @transform_2, window_bounds = array<i64: 32, 16>}, {pipeline_mode = #tpu.pipeline_mode<synchronous>, transform_indices = @transform_3, window_bounds = array<i64: 16, 4>}, {transform_indices = @transform_4, window_bounds = array<i64: 2, 4, 128>}]} {
    %c0 = arith.constant 0 : index
    %c0_0 = arith.constant 0 : index
    %c0_1 = arith.constant 0 : index
    %0 = vector.load %arg2[%c0, %c0_0, %c0_1] : memref<2x128x32xf32, #tpu.memory_space<vmem>>, vector<2x128x32xf32>
    %1 = vector.shape_cast %0 : vector<2x128x32xf32> to vector<256x32xf32>
    %c0_2 = arith.constant 0 : index
    %c0_3 = arith.constant 0 : index
    %2 = vector.load %arg3[%c0_2, %c0_3] : memref<32x16xf32, #tpu.memory_space<vmem>>, vector<32x16xf32>
    %cst = arith.constant dense<0.000000e+00> : vector<256x16xf32>
    %3 = tpu.matmul %1, %2, %cst {dimension_numbers = #tpu.dot_dimension_numbers<[1], [0], [0], [1], [0, 0, 1, 1], [], []>} : vector<256x32xf32>, vector<32x16xf32>, vector<256x16xf32> -> vector<256x16xf32>
    %4 = math.tanh %3 : vector<256x16xf32>
    %c0_4 = arith.constant 0 : index
    %c0_5 = arith.constant 0 : index
    %5 = vector.load %arg4[%c0_4, %c0_5] : memref<16x4xf32, #tpu.memory_space<vmem>>, vector<16x4xf32>
    %cst_6 = arith.constant dense<0.000000e+00> : vector<256x4xf32>
    %6 = tpu.matmul %4, %5, %cst_6 {dimension_numbers = #tpu.dot_dimension_numbers<[1], [0], [0], [1], [0, 0, 1, 1], [], []>} : vector<256x16xf32>, vector<16x4xf32>, vector<256x4xf32> -> vector<256x4xf32>
    %7 = vector.shape_cast %6 : vector<256x4xf32> to vector<2x128x4xf32>
    %8 = tpu.transpose %7, [0, 2, 1] : vector<2x128x4xf32> -> vector<2x4x128xf32>
    %9 = tpu.iota {dimensions = array<i32: 2>} : vector<2x4x128xi32>
    %c0_7 = arith.constant 0 : index
    %c0_8 = arith.constant 0 : index
    %c0_9 = arith.constant 0 : index
    %10 = vector.load %arg1[%c0_7, %c0_8, %c0_9] : memref<2x1x1xi32, #tpu.memory_space<vmem>>, vector<2x1x1xi32>
    %11 = vector.broadcast %10 : vector<2x1x1xi32> to vector<2x4x128xi32>
    %12 = arith.cmpi sge, %9, %11 : vector<2x4x128xi32>
    %cst_10 = arith.constant -1.000000e+30 : f32
    %13 = vector.broadcast %cst_10 : f32 to vector<2x4x128xf32>
    %14 = arith.select %12, %13, %8 : vector<2x4x128xi1>, vector<2x4x128xf32>
    %cst_11 = arith.constant dense<0xFF800000> : vector<2x4xf32>
    %15 = vector.multi_reduction <maximumf>, %14, %cst_11 [2] : vector<2x4x128xf32> to vector<2x4xf32>
    %16 = vector.shape_cast %15 : vector<2x4xf32> to vector<2x4x1xf32>
    %17 = vector.broadcast %16 : vector<2x4x1xf32> to vector<2x4x128xf32>
    %18 = arith.subf %14, %17 : vector<2x4x128xf32>
    %19 = math.exp %18 : vector<2x4x128xf32>
    %cst_12 = arith.constant dense<0.000000e+00> : vector<2x4xf32>
    %20 = vector.multi_reduction <add>, %19, %cst_12 [2] : vector<2x4x128xf32> to vector<2x4xf32>
    %21 = vector.shape_cast %20 : vector<2x4xf32> to vector<2x4x1xf32>
    %22 = tpu.reciprocal %21 {approx = true} : vector<2x4x1xf32> -> vector<2x4x1xf32>
    %23 = vector.broadcast %22 : vector<2x4x1xf32> to vector<2x4x128xf32>
    %24 = arith.mulf %19, %23 : vector<2x4x128xf32>
    %c0_13 = arith.constant 0 : index
    %c0_14 = arith.constant 0 : index
    %c0_15 = arith.constant 0 : index
    %25 = vector.load %arg5[%c0_13, %c0_14, %c0_15] : memref<2x4x128xf32, #tpu.memory_space<vmem>>, vector<2x4x128xf32>
    tpu.vector_store %arg5[%c0_13, %c0_14, %c0_15], %24 {strides = array<i32>} : memref<2x4x128xf32, #tpu.memory_space<vmem>>, vector<2x4x128xf32>,
    return
  }
  func.func @transform_0(%arg0: i32) -> (i32, i32, i32) {
    %c0_i32 = arith.constant 0 : i32
    %c0_i32_0 = arith.constant 0 : i32
    %c0_i32_1 = arith.constant 0 : i32
    return %arg0, %c0_i32, %c0_i32_0 : i32, i32, i32
  }
  func.func @transform_1(%arg0: i32) -> (i32, i32, i32) {
    %c0_i32 = arith.constant 0 : i32
    %c0_i32_0 = arith.constant 0 : i32
    %c0_i32_1 = arith.constant 0 : i32
    return %arg0, %c0_i32, %c0_i32_0 : i32, i32, i32
  }
  func.func @transform_2(%arg0: i32) -> (i32, i32) {
    %c0_i32 = arith.constant 0 : i32
    %c0_i32_0 = arith.constant 0 : i32
    %c0_i32_1 = arith.constant 0 : i32
    return %c0_i32, %c0_i32_0 : i32, i32
  }
  func.func @transform_3(%arg0: i32) -> (i32, i32) {
    %c0_i32 = arith.constant 0 : i32
    %c0_i32_0 = arith.constant 0 : i32
    %c0_i32_1 = arith.constant 0 : i32
    return %c0_i32, %c0_i32_0 : i32, i32
  }
  func.func @transform_4(%arg0: i32) -> (i32, i32, i32) {
    %c0_i32 = arith.constant 0 : i32
    %c0_i32_0 = arith.constant 0 : i32
    %c0_i32_1 = arith.constant 0 : i32
    return %arg0, %c0_i32, %c0_i32_0 : i32, i32, i32
  }
}

</mosaic_0001>

<bundles_post_ra>
// kernel: tpu_custom_call.1
= control target key start
LH: loop header
LB: loop body
LE: loop exit
PB: predicated region body
PF: predicated region fallthrough
CT: control target
= control target key end

     0   :  { %9 = vsyncpa [#allocation3], 0  ;;  %s1844_s0 = inlined_call_operand.vmem [shape: s32[4,1,1], index: 0, kind: input, shape index: {}]   ;;  %s1845_s1 = inlined_call_operand.vmem [shape: f32[4,128,32], index: 1, kind: input, shape index: {}]   ;;  %s1846_s2 = inlined_call_operand.vmem [shape: f32[32,16], index: 2, kind: input, shape index: {}]   ;;  %s1847_s3 = inlined_call_operand.vmem [shape: f32[16,4], index: 3, kind: input, shape index: {}]   ;;  %s1848_s4 = inlined_call_operand.hbm [shape: f32[4,4,128], index: 4, kind: output, shape index: {}]  }
   0x1   :  { %11 = vsyncpa [#allocation3 + $0x1], 0  ;;  %s1611_s15 = smov 0   ;;  %s1613_s16 = smov 0  }
   0x2   :  { %s1615_s17 = smov 0   ;;  %s1617_s18 = smov 0  }
   0x3 LB: > { %s1632_s19 = sadd.s32 4294967295, %s1580_s18   ;;  %s1131_s20 = sadd.s32 4294967294, %s1580_s18   ;;  %s1580_s18 = sphi %s1617_s18, %s1854_s18   ;;  %s1576_s17 = sphi %s1615_s17, %s1853_s17   ;;  %s1572_s16 = sphi %s1613_s16, %s1852_s16   ;;  %s1568_s15 = sphi %s1611_s15, %s1851_s15  }
   0x4   : > { %s1636_s21 = sadd.s32 1, %s1580_s18   ;;  %s118_s22 = sadd.s32 1, %s1576_s17 }
   0x5   : > { %s115_s23 = ssub.s32 %s1580_s18, %s1636_s21  ;;  %p128_p0 = scmp.ne.s32.totalorder %s1576_s17, %s1572_s16 }
   0x6   : > { %p116_p1 = scmp.eq.s32.totalorder %s115_s23, 0  ;;  %p129_p2 = scmp.eq.s32.totalorder %s1632_s19, 1 }
   0x7   : > { %p134_p3 = scmp.ne.s32.totalorder %s1572_s16, %s1568_s15  ;;  %p135_p4 = scmp.eq.s32.totalorder %s1131_s20, 1 }
   0x8   : > { %s1647_s24 = scalar_select %p116_p1, %s1576_s17, %s118_s22  }
   0x9   : > { %p1649_p5 = por %p129_p2, %p128_p0  ;;  %p1653_p6 = por %p135_p4, %p134_p3 }
   0xa   : > { %p1134_p7 = scmp.ge.s32.totalorder %s1580_s18, 1  ;;  %p177_p8 = scmp.lt.s32.totalorder %s1580_s18, 3 }
   0xc   : > { %p178_p9 = pnand %p1134_p7, %p177_p8 }
   0xd   : > { %v253_v0 = vld [vmem:[%s1846_s2] sm:$0xff] (!%p178_p9)  ;;  %v254_v1 = vld [vmem:[%s1846_s2 + $0x8] sm:$0xff] (!%p178_p9)  ;;  %v255_v2 = vld [vmem:[%s1846_s2 + $0x10] sm:$0xff] (!%p178_p9)  ;;  %s1136_s7 = sshll.u32 (!%p178_p9), %s1632_s19, 1  ;;  %vm257_vm0 = vcmask (!%p178_p9), 261120   ;;  %v1582_v41 = vmov (!%p178_p9), 0  }
   0xe   : > { %181 = sbr.rel (%p178_p9) target bundleno = 955 (0x3bb), region = 36  ;;  %v1391_v3 = vpack.c.bf16 (!%p178_p9), %v254_v1, %v253_v0  ;;  %v256_v4 = vld [vmem:[%s1846_s2 + $0x18] sm:$0xff] (!%p178_p9)  ;;  %p209_p10 = scmp.lt.s32.totalorder (!%p178_p9), %s1136_s7, 3  ;;  %v611_v38 = vld [vmem:[%s1847_s3] sm:$0xff] (!%p178_p9)  ;;  %v612_v39 = vld [vmem:[%s1847_s3 + $0x8] sm:$0xff] (!%p178_p9)  ;;  %1445 = vset.pattern.permute.xlu0 (!%p178_p9), %v1582_v41  ;;  %vm613_vm1 = vcmask (!%p178_p9), 130048  }
   0xf   : > { %v1395_v5 = vpack.c.bf16 (!%p178_p9), %v256_v4, %v255_v2  ;;  %v1399_v40 = vpack.c.bf16 (!%p178_p9), %v612_v39, %v611_v38  ;;  %vm1021_vm2 = vcmask (!%p178_p9), 1043456   ;;  %s205_s30 = sand.u32 (!%p178_p9), 1, %s1572_s16  }
  0x10   : > { %1392 = vmatprep.subr.bf16.mxu0 (!%p178_p9), %v1391_v3  ;;  %s1135_s5 = sshll.u32 (!%p178_p9), %s205_s30, 3  ;;  %s1803_s12 = scalar_lea.sflag (!%p178_p9), [#allocation3], %s205_s30 }
  0x11   : > { %1394 = vmatpush3.bf16.msra.mxu0 (!%p178_p9), %v1391_v3  ;;  %1400 = vmatprep.subr.bf16.mxu1 (!%p178_p9), %v1399_v40  ;;  %s207_s6 = scalar_lea.vmem (!%p178_p9), [#allocation2], %s1135_s5 }
  0x12   : > { %1396 = vmatprep.subr.bf16.mxu0 (!%p178_p9), %v1395_v5  ;;  %1402 = vmatpush3.bf16.msra.mxu1 (!%p178_p9), %v1399_v40  ;;  %s1060_s8 = sshll.u32 (!%p178_p9), %s207_s6, 4  ;;  %s1801_s8 = int_to_ptr.vmem [resolvable:$true] %s1060_s8 }
  0x15   : > { %s1856_s7 = smov (!%p209_p10, %s1136_s7), 3  ;;  %1398 = vmatpush3.bf16.msra.mxu0 %v1395_v5 }
  0x16   : > { %s1211_s10 = sshll.u32 %s1856_s7, 7  ;;  %s1754_s29 = scalar_lea.vmem %s1844_s0, %s1856_s7 }
  0x17   : > { %s1678_s13 = scalar_lea.vmem %s1845_s1, %s1211_s10  ;;  %v1204_v42 = vld [vmem:[%s1754_s29] ss:$0 sm:$0xff]  ;;  %s1212_s7 = sshll.u32 %s1632_s19, 7 }
  0x18   : > { %v221_v6 = vld [vmem:[%s1678_s13] sm:$0xff]  ;;  %v222_v7 = vld [vmem:[%s1678_s13 + $0x8] sm:$0xff]  ;;  %v223_v8 = vld [vmem:[%s1678_s13 + $0x10] sm:$0xff]  ;;  %1012 = vperm.xlu0 %1445, %v1204_v42   ;;  %s1799_s11 = scalar_lea.hbm %s1848_s4, %s1212_s7  ;;  %s1583_s19 = smov [#allocation2]  }
  0x19   : > { %1291 = vmatprep.mubr.msk.f32.mxu0 %vm257_vm0, %v221_v6  ;;  %v224_v9 = vld [vmem:[%s1678_s13 + $0x18] sm:$0xff]  ;;  %v225_v10 = vld [vmem:[%s1678_s13 + $0x20] sm:$0xff]  ;;  %v226_v11 = vld [vmem:[%s1678_s13 + $0x28] sm:$0xff]  ;;  %s1522_s14 = sshll.u32 %s1583_s19, 4  ;;  %s1523_s14 = int_to_ptr.vmem [resolvable:$false] %s1522_s14 }
  0x1a   : > { %1292 = vmatmul.mubr.msk.f32.vlgmr.msra.gmra.mrb[0].mxu0 %vm257_vm0, %v222_v7  ;;  %v227_v12 = vld [vmem:[%s1678_s13 + $0x30] sm:$0xff]  ;;  %v228_v13 = vld [vmem:[%s1678_s13 + $0x38] sm:$0xff]  ;;  %v229_v14 = vld [vmem:[%s1678_s13 + $0x40] sm:$0xff]  ;;  %s1524_s20 = scalar_lea.vmem %s1523_s14, 256  ;;  %p1525_p0 = scmp.lt.s32.totalorder %s1801_s8, %s1523_s14 }
  0x1b   : > { %1294 = vmatprep.mubr.msk.f32.mxu0 %vm257_vm0, %v223_v8  ;;  %v230_v15 = vld [vmem:[%s1678_s13 + $0x48] sm:$0xff]  ;;  %v231_v16 = vld [vmem:[%s1678_s13 + $0x50] sm:$0xff]  ;;  %v232_v17 = vld [vmem:[%s1678_s13 + $0x58] sm:$0xff] }
  0x1c   : > { %v233_v18 = vld [vmem:[%s1678_s13 + $0x60] sm:$0xff]  ;;  %v234_v19 = vld [vmem:[%s1678_s13 + $0x68] sm:$0xff]  ;;  %v235_v20 = vld [vmem:[%s1678_s13 + $0x70] sm:$0xff] }
  0x1d   : > { %v236_v21 = vld [vmem:[%s1678_s13 + $0x78] sm:$0xff]  ;;  %v237_v22 = vld [vmem:[%s1678_s13 + $0x80] sm:$0xff]  ;;  %v238_v23 = vld [vmem:[%s1678_s13 + $0x88] sm:$0xff] }
  0x1e   : > { %1295 = vmatmul.mubr.msk.f32.gmra.mrb[2].mxu0 %vm257_vm0, %v224_v9  ;;  %v239_v24 = vld [vmem:[%s1678_s13 + $0x90] sm:$0xff]  ;;  %v240_v25 = vld [vmem:[%s1678_s13 + $0x98] sm:$0xff]  ;;  %v241_v26 = vld [vmem:[%s1678_s13 + $0xa0] sm:$0xff] }
  0x1f   : > { %1297 = vmatprep.mubr.msk.f32.mxu0 %vm257_vm0, %v225_v10  ;;  %v242_v27 = vld [vmem:[%s1678_s13 + $0xa8] sm:$0xff]  ;;  %v243_v28 = vld [vmem:[%s1678_s13 + $0xb0] sm:$0xff]  ;;  %v244_v29 = vld [vmem:[%s1678_s13 + $0xb8] sm:$0xff] }
  0x20   : > { %v245_v30 = vld [vmem:[%s1678_s13 + $0xc0] sm:$0xff]  ;;  %v246_v31 = vld [vmem:[%s1678_s13 + $0xc8] sm:$0xff]  ;;  %v247_v32 = vld [vmem:[%s1678_s13 + $0xd0] sm:$0xff] }
  0x21   : > { %v248_v33 = vld [vmem:[%s1678_s13 + $0xd8] sm:$0xff]  ;;  %v249_v34 = vld [vmem:[%s1678_s13 + $0xe0] sm:$0xff]  ;;  %v250_v35 = vld [vmem:[%s1678_s13 + $0xe8] sm:$0xff] }
  0x22   : > { %1298 = vmatmul.mubr.msk.f32.gmra.mrb[4].mxu0 %vm257_vm0, %v226_v11  ;;  %v251_v36 = vld [vmem:[%s1678_s13 + $0xf0] sm:$0xff]  ;;  %v252_v37 = vld [vmem:[%s1678_s13 + $0xf8] sm:$0xff]  ;;  %s1518_s13 = scalar_lea.vmem %s1801_s8, 128 }
  0x23   : > { %1300 = vmatprep.mubr.msk.f32.mxu0 %vm257_vm0, %v227_v12  ;;  %p1519_p11 = scmp.ne.s32.totalorder %s1801_s8, %s1518_s13  ;;  %p1526_p1 = scmp.lt.s32.totalorder %s1524_s20, %s1518_s13 }
  0x25   : > { %p1520_p12 = pnand %p1519_p11, %p1649_p5  ;;  %p1527_p2 = por %p1526_p1, %p1525_p0 }
  0x26   : > { %1301 = vmatmul.mubr.msk.f32.gmra.mrb[6].mxu0 %vm257_vm0, %v228_v13 }
  0x27   : > { %1303 = vmatprep.mubr.msk.f32.mxu0 %vm257_vm0, %v229_v14  ;;  %p1521_p13 = pneg %p1520_p12 }
  0x29   : > { %p1528_p3 = pnand %p1527_p2, %p1521_p13 }
  0x2a   : > { %1304 = vmatmul.mubr.msk.f32.gmra.mrb[8].mxu0 %vm257_vm0, %v230_v15 }
  0x2b   : > { %1306 = vmatprep.mubr.msk.f32.mxu0 %vm257_vm0, %v231_v16 }
  0x2e   : > { %1307 = vmatmul.mubr.msk.f32.gmra.mrb[10].mxu0 %vm257_vm0, %v232_v17 }
  0x2f   : > { %1309 = vmatprep.mubr.msk.f32.mxu0 %vm257_vm0, %v233_v18 }
  0x32   : > { %1310 = vmatmul.mubr.msk.f32.gmra.mrb[12].mxu0 %vm257_vm0, %v234_v19 }
  0x33   : > { %1312 = vmatprep.mubr.msk.f32.mxu0 %vm257_vm0, %v235_v20 }
  0x36   : > { %1313 = vmatmul.mubr.msk.f32.gmra.mrb[14].mxu0 %vm257_vm0, %v236_v21 }
  0x37   : > { %1315 = vmatprep.mubr.msk.f32.mxu0 %vm257_vm0, %v237_v22 }
  0x3a   : > { %1316 = vmatmul.mubr.msk.f32.gmra.mrb[16].mxu0 %vm257_vm0, %v238_v23 }
  0x3b   : > { %1318 = vmatprep.mubr.msk.f32.mxu0 %vm257_vm0, %v239_v24 }
  0x3e   : > { %1319 = vmatmul.mubr.msk.f32.gmra.mrb[18].mxu0 %vm257_vm0, %v240_v25 }
  0x3f   : > { %1321 = vmatprep.mubr.msk.f32.mxu0 %vm257_vm0, %v241_v26 }
  0x42   : > { %1322 = vmatmul.mubr.msk.f32.gmra.mrb[20].mxu0 %vm257_vm0, %v242_v27 }
  0x43   : > { %1324 = vmatprep.mubr.msk.f32.mxu0 %vm257_vm0, %v243_v28 }
  0x46   : > { %1325 = vmatmul.mubr.msk.f32.gmra.mrb[22].mxu0 %vm257_vm0, %v244_v29 }
  0x47   : > { %1327 = vmatprep.mubr.msk.f32.mxu0 %vm257_vm0, %v245_v30 }
  0x4a   : > { %1328 = vmatmul.mubr.msk.f32.gmra.mrb[24].mxu0 %vm257_vm0, %v246_v31 }
  0x4b   : > { %1330 = vmatprep.mubr.msk.f32.mxu0 %vm257_vm0, %v247_v32 }
  0x4e   : > { %1331 = vmatmul.mubr.msk.f32.gmra.mrb[26].mxu0 %vm257_vm0, %v248_v33 }
  0x4f   : > { %1333 = vmatprep.mubr.msk.f32.mxu0 %vm257_vm0, %v249_v34 }
  0x52   : > { %1334 = vmatmul.mubr.msk.f32.gmra.mrb[28].mxu0 %vm257_vm0, %v250_v35 }
  0x53   : > { %1336 = vmatprep.mubr.msk.f32.mxu0 %vm257_vm0, %v251_v36 }
  0x56   : > { %1337 = vmatmul.mubr.msk.f32.gmra.mrb[30].mxu0 %vm257_vm0, %v252_v37 }
  0xed   : > { %v1293_v43 = vpop.f32.mrb[0].mxu0 }
  0xee   : > { %v420_v44 = vpop.f32.mrb[1].mxu0 }
  0xef   : > { %1446 = vtanh.f32 %v420_v44 }
  0xf0   : > { %1448 = vtanh.f32 %v1293_v43  ;;  %v1205_v43 = vld [vmem:[%s1754_s29 + $0x1] ss:$0 sm:$0xff] }
  0xf1   : > { %v1296_v45 = vpop.f32.mrb[2].mxu0  ;;  %1015 = vperm.xlu0 %1445, %v1205_v43  }
  0xf2   : > { %v430_v46 = vpop.f32.mrb[3].mxu0 }
  0xf3   : > { %1450 = vtanh.f32 %v430_v46 }
  0xf4   : > { %1452 = vtanh.f32 %v1296_v45 }
  0xf5   : > { %v1299_v47 = vpop.f32.mrb[4].mxu0 }
  0xf6   : > { %v440_v48 = vpop.f32.mrb[5].mxu0 }
  0xf7   : > { %1454 = vtanh.f32 %v440_v48 }
  0xf8   : > { %1456 = vtanh.f32 %v1299_v47 }
  0xf9   : > { %v1447_v49 = vpop.eup %1446  ;;  %v1302_v50 = vpop.f32.mrb[6].mxu0 }
  0xfa   : > { %v1449_v51 = vpop.eup %1448  ;;  %v450_v52 = vpop.f32.mrb[7].mxu0  ;;  %1343 = vmatprep.mubr.msk.f32.mxu1 %vm613_vm1, %v1447_v49 }
  0xfb   : > { %1458 = vtanh.f32 %v450_v52  ;;  %1344 = vmatmul.mubr.msk.f32.vlgmr.msra.gmra.mrb[0].mxu1 %vm613_vm1, %v1449_v51 }
  0xfc   : > { %1460 = vtanh.f32 %v1302_v50 }
  0xfd   : > { %v1451_v53 = vpop.eup %1450  ;;  %v1305_v54 = vpop.f32.mrb[8].mxu0 }
  0xfe   : > { %v1453_v55 = vpop.eup %1452  ;;  %v460_v56 = vpop.f32.mrb[9].mxu0  ;;  %1346 = vmatprep.mubr.msk.f32.mxu1 %vm613_vm1, %v1451_v53 }
  0xff   : > { %1462 = vtanh.f32 %v460_v56  ;;  %1347 = vmatmul.mubr.msk.f32.gmra.mrb[2].mxu1 %vm613_vm1, %v1453_v55 }
 0x100   : > { %1464 = vtanh.f32 %v1305_v54 }
 0x101   : > { %v1455_v57 = vpop.eup %1454  ;;  %v1308_v58 = vpop.f32.mrb[10].mxu0 }
 0x102   : > { %v1457_v59 = vpop.eup %1456  ;;  %v470_v60 = vpop.f32.mrb[11].mxu0  ;;  %1349 = vmatprep.mubr.msk.f32.mxu1 %vm613_vm1, %v1455_v57 }
 0x103   : > { %1466 = vtanh.f32 %v470_v60  ;;  %1350 = vmatmul.mubr.msk.f32.gmra.mrb[4].mxu1 %vm613_vm1, %v1457_v59 }
 0x104   : > { %1468 = vtanh.f32 %v1308_v58 }
 0x105   : > { %v1459_v61 = vpop.eup %1458  ;;  %v1311_v62 = vpop.f32.mrb[12].mxu0 }
 0x106   : > { %v1461_v63 = vpop.eup %1460  ;;  %v480_v0 = vpop.f32.mrb[13].mxu0  ;;  %1352 = vmatprep.mubr.msk.f32.mxu1 %vm613_vm1, %v1459_v61 }
 0x107   : > { %1470 = vtanh.f32 %v480_v0  ;;  %1353 = vmatmul.mubr.msk.f32.gmra.mrb[6].mxu1 %vm613_vm1, %v1461_v63 }
 0x108   : > { %1472 = vtanh.f32 %v1311_v62 }
 0x109   : > { %v1463_v1 = vpop.eup %1462  ;;  %v1314_v2 = vpop.f32.mrb[14].mxu0 }
 0x10a   : > { %v1465_v3 = vpop.eup %1464  ;;  %v490_v4 = vpop.f32.mrb[15].mxu0  ;;  %1355 = vmatprep.mubr.msk.f32.mxu1 %vm613_vm1, %v1463_v1 }
 0x10b   : > { %1474 = vtanh.f32 %v490_v4  ;;  %1356 = vmatmul.mubr.msk.f32.gmra.mrb[8].mxu1 %vm613_vm1, %v1465_v3 }
 0x10c   : > { %1476 = vtanh.f32 %v1314_v2 }
 0x10d   : > { %v1467_v5 = vpop.eup %1466  ;;  %v1317_v6 = vpop.f32.mrb[16].mxu0 }
 0x10e   : > { %v1469_v7 = vpop.eup %1468  ;;  %v500_v8 = vpop.f32.mrb[17].mxu0  ;;  %1358 = vmatprep.mubr.msk.f32.mxu1 %vm613_vm1, %v1467_v5 }
 0x10f   : > { %1478 = vtanh.f32 %v500_v8  ;;  %1359 = vmatmul.mubr.msk.f32.gmra.mrb[10].mxu1 %vm613_vm1, %v1469_v7 }
 0x110   : > { %1480 = vtanh.f32 %v1317_v6 }
 0x111   : > { %v1471_v9 = vpop.eup %1470  ;;  %v1320_v10 = vpop.f32.mrb[18].mxu0 }
 0x112   : > { %v1473_v11 = vpop.eup %1472  ;;  %1482 = vtanh.f32 %v1320_v10  ;;  %1361 = vmatprep.mubr.msk.f32.mxu1 %vm613_vm1, %v1471_v9  ;;  %v510_v12 = vpop.f32.mrb[19].mxu0 }
 0x113   : > { %1484 = vtanh.f32 %v510_v12  ;;  %1362 = vmatmul.mubr.msk.f32.gmra.mrb[12].mxu1 %vm613_vm1, %v1473_v11  ;;  %v999_v12 = vlaneseq }
 0x115   : > { %v1475_v13 = vpop.eup %1474  ;;  %v1323_v14 = vpop.f32.mrb[20].mxu0 }
 0x116   : > { %v1477_v15 = vpop.eup %1476  ;;  %1364 = vmatprep.mubr.msk.f32.mxu1 %vm613_vm1, %v1475_v13  ;;  %1486 = vtanh.f32 %v1323_v14  ;;  %v520_v16 = vpop.f32.mrb[21].mxu0  ;;  %v1000_v13 = vand.u32 127, %v999_v12 }
 0x117   : > { %1365 = vmatmul.mubr.msk.f32.gmra.mrb[14].mxu1 %vm613_vm1, %v1477_v15  ;;  %1488 = vtanh.f32 %v520_v16  ;;  %v1013_v14 = vpop.permute.xlu0 %1012 }
 0x118   : > { %vm1017_vm3 = vcmp.ge.s32.totalorder %v1000_v13, %v1013_v14 }
 0x119   : > { %v1479_v17 = vpop.eup %1478  ;;  %v1326_v18 = vpop.f32.mrb[22].mxu0 }
 0x11a   : > { %v1481_v19 = vpop.eup %1480  ;;  %1367 = vmatprep.mubr.msk.f32.mxu1 %vm613_vm1, %v1479_v17  ;;  %1490 = vtanh.f32 %v1326_v18  ;;  %v530_v20 = vpop.f32.mrb[23].mxu0 }
 0x11b   : > { %1368 = vmatmul.mubr.msk.f32.gmra.mrb[16].mxu1 %vm613_vm1, %v1481_v19  ;;  %1492 = vtanh.f32 %v530_v20 }
 0x11c   : > { %v1483_v21 = vpop.eup %1482 }
 0x11d   : > { %v1485_v22 = vpop.eup %1484  ;;  %v1329_v23 = vpop.f32.mrb[24].mxu0 }
 0x11e   : > { %1370 = vmatprep.mubr.msk.f32.mxu1 %vm613_vm1, %v1485_v22  ;;  %1494 = vtanh.f32 %v1329_v23  ;;  %v540_v24 = vpop.f32.mrb[25].mxu0 }
 0x11f   : > { %1371 = vmatmul.mubr.msk.f32.gmra.mrb[18].mxu1 %vm613_vm1, %v1483_v21  ;;  %1496 = vtanh.f32 %v540_v24 }
 0x120   : > { %v1487_v25 = vpop.eup %1486 }
 0x121   : > { %v1489_v26 = vpop.eup %1488  ;;  %v1332_v27 = vpop.f32.mrb[26].mxu0 }
 0x122   : > { %1373 = vmatprep.mubr.msk.f32.mxu1 %vm613_vm1, %v1489_v26  ;;  %1498 = vtanh.f32 %v1332_v27  ;;  %v550_v28 = vpop.f32.mrb[27].mxu0 }
 0x123   : > { %1374 = vmatmul.mubr.msk.f32.gmra.mrb[20].mxu1 %vm613_vm1, %v1487_v25  ;;  %1500 = vtanh.f32 %v550_v28 }
 0x124   : > { %v1491_v29 = vpop.eup %1490 }
 0x125   : > { %v1493_v30 = vpop.eup %1492  ;;  %v1335_v31 = vpop.f32.mrb[28].mxu0 }
 0x126   : > { %1376 = vmatprep.mubr.msk.f32.mxu1 %vm613_vm1, %v1493_v30  ;;  %1502 = vtanh.f32 %v1335_v31  ;;  %v560_v32 = vpop.f32.mrb[29].mxu0 }
 0x127   : > { %1377 = vmatmul.mubr.msk.f32.gmra.mrb[22].mxu1 %vm613_vm1, %v1491_v29  ;;  %1504 = vtanh.f32 %v560_v32 }
 0x128   : > { %v1495_v33 = vpop.eup %1494 }
 0x129   : > { %v1497_v34 = vpop.eup %1496  ;;  %v1338_v35 = vpop.f32.mrb[30].mxu0 }
 0x12a   : > { %1379 = vmatprep.mubr.msk.f32.mxu1 %vm613_vm1, %v1497_v34  ;;  %1506 = vtanh.f32 %v1338_v35  ;;  %v570_v36 = vpop.f32.mrb[31].mxu0 }
 0x12b   : > { %1380 = vmatmul.mubr.msk.f32.gmra.mrb[24].mxu1 %vm613_vm1, %v1495_v33  ;;  %1508 = vtanh.f32 %v570_v36 }
 0x12c   : > { %v1499_v37 = vpop.eup %1498 }
 0x12d   : > { %v1501_v38 = vpop.eup %1500 }
 0x12e   : > { %1382 = vmatprep.mubr.msk.f32.mxu1 %vm613_vm1, %v1501_v38 }
 0x12f   : > { %1383 = vmatmul.mubr.msk.f32.gmra.mrb[26].mxu1 %vm613_vm1, %v1499_v37 }
 0x130   : > { %v1503_v39 = vpop.eup %1502 }
 0x131   : > { %v1505_v40 = vpop.eup %1504 }
 0x132   : > { %1385 = vmatprep.mubr.msk.f32.mxu1 %vm613_vm1, %v1505_v40 }
 0x133   : > { %1386 = vmatmul.mubr.msk.f32.gmra.mrb[28].mxu1 %vm613_vm1, %v1503_v39 }
 0x134   : > { %v1507_v41 = vpop.eup %1506 }
 0x135   : > { %v1509_v42 = vpop.eup %1508 }
 0x136   : > { %1388 = vmatprep.mubr.msk.f32.mxu1 %vm613_vm1, %v1509_v42 }
 0x137   : > { %1389 = vmatmul.mubr.msk.f32.gmra.mrb[30].mxu1 %vm613_vm1, %v1507_v41 }
 0x170   : > { %v1016_v18 = vpop.permute.xlu0 %1015 }
 0x171   : > { %vm1018_vm4 = vcmp.ge.s32.totalorder %v1000_v13, %v1016_v18 }
 0x1ce   : > { %v1345_v44 = vpop.f32.mrb[0].mxu1 }
 0x1cf   : > { %v776_v45 = vpop.f32.mrb[1].mxu1 }
 0x1d0   : > { %935 = vxpose.xlu1.b32.start [1/16] (narrow) %v776_v45, 8 }
 0x1d2   : > { %v1348_v46 = vpop.f32.mrb[2].mxu1 }
 0x1d3   : > { %v786_v47 = vpop.f32.mrb[3].mxu1 }
 0x1d4   : > { %936 = vxpose.xlu1.b32.cont [2/16] (narrow) %v1345_v44, 8 }
 0x1d6   : > { %v1351_v48 = vpop.f32.mrb[4].mxu1 }
 0x1d7   : > { %v796_v49 = vpop.f32.mrb[5].mxu1 }
 0x1d8   : > { %937 = vxpose.xlu1.b32.cont [3/16] (narrow) %v786_v47, 8 }
 0x1da   : > { %v1354_v50 = vpop.f32.mrb[6].mxu1 }
 0x1db   : > { %v806_v51 = vpop.f32.mrb[7].mxu1 }
 0x1dc   : > { %938 = vxpose.xlu1.b32.cont [4/16] (narrow) %v1348_v46, 8 }
 0x1de   : > { %v1357_v52 = vpop.f32.mrb[8].mxu1 }
 0x1df   : > { %v816_v53 = vpop.f32.mrb[9].mxu1 }
 0x1e0   : > { %939 = vxpose.xlu1.b32.cont [5/16] (narrow) %v796_v49, 8 }
 0x1e2   : > { %v1360_v54 = vpop.f32.mrb[10].mxu1 }
 0x1e3   : > { %v826_v55 = vpop.f32.mrb[11].mxu1 }
 0x1e4   : > { %940 = vxpose.xlu1.b32.cont [6/16] (narrow) %v1351_v48, 8 }
 0x1e6   : > { %v1363_v56 = vpop.f32.mrb[12].mxu1 }
 0x1e7   : > { %v836_v57 = vpop.f32.mrb[13].mxu1 }
 0x1e8   : > { %941 = vxpose.xlu1.b32.cont [7/16] (narrow) %v806_v51, 8 }
 0x1ea   : > { %v1366_v58 = vpop.f32.mrb[14].mxu1 }
 0x1eb   : > { %v846_v59 = vpop.f32.mrb[15].mxu1 }
 0x1ec   : > { %942 = vxpose.xlu1.b32.cont [8/16] (narrow) %v1354_v50, 8 }
 0x1ee   : > { %v1369_v60 = vpop.f32.mrb[16].mxu1 }
 0x1ef   : > { %v856_v61 = vpop.f32.mrb[17].mxu1 }
 0x1f0   : > { %943 = vxpose.xlu1.b32.cont [9/16] (narrow) %v816_v53, 8  ;;  %967 = vxpose.xlu0.b32.start [1/16] (narrow) %v856_v61, 8 }
 0x1f2   : > { %v1372_v62 = vpop.f32.mrb[18].mxu1 }
 0x1f3   : > { %v866_v63 = vpop.f32.mrb[19].mxu1 }
 0x1f4   : > { %944 = vxpose.xlu1.b32.cont [10/16] (narrow) %v1357_v52, 8  ;;  %968 = vxpose.xlu0.b32.cont [2/16] (narrow) %v1369_v60, 8 }
 0x1f6   : > { %v1375_v0 = vpop.f32.mrb[20].mxu1 }
 0x1f7   : > { %v876_v1 = vpop.f32.mrb[21].mxu1 }
 0x1f8   : > { %945 = vxpose.xlu1.b32.cont [11/16] (narrow) %v826_v55, 8  ;;  %969 = vxpose.xlu0.b32.cont [3/16] (narrow) %v866_v63, 8 }
 0x1fa   : > { %v1378_v2 = vpop.f32.mrb[22].mxu1 }
 0x1fb   : > { %v886_v3 = vpop.f32.mrb[23].mxu1 }
 0x1fc   : > { %946 = vxpose.xlu1.b32.cont [12/16] (narrow) %v1360_v54, 8  ;;  %970 = vxpose.xlu0.b32.cont [4/16] (narrow) %v1372_v62, 8 }
 0x1fe   : > { %v1381_v4 = vpop.f32.mrb[24].mxu1 }
 0x1ff   : > { %v896_v5 = vpop.f32.mrb[25].mxu1 }
 0x200   : > { %947 = vxpose.xlu1.b32.cont [13/16] (narrow) %v836_v57, 8  ;;  %971 = vxpose.xlu0.b32.cont [5/16] (narrow) %v876_v1, 8 }
 0x202   : > { %v1384_v6 = vpop.f32.mrb[26].mxu1 }
 0x203   : > { %v906_v7 = vpop.f32.mrb[27].mxu1 }
 0x204   : > { %948 = vxpose.xlu1.b32.cont [14/16] (narrow) %v1363_v56, 8  ;;  %972 = vxpose.xlu0.b32.cont [6/16] (narrow) %v1375_v0, 8 }
 0x206   : > { %v1387_v8 = vpop.f32.mrb[28].mxu1 }
 0x207   : > { %v916_v9 = vpop.f32.mrb[29].mxu1 }
 0x208   : > { %949 = vxpose.xlu1.b32.cont [15/16] (narrow) %v846_v59, 8  ;;  %973 = vxpose.xlu0.b32.cont [7/16] (narrow) %v886_v3, 8 }
 0x20a   : > { %v1390_v10 = vpop.f32.mrb[30].mxu1 }
 0x20b   : > { %v926_v11 = vpop.f32.mrb[31].mxu1 }
 0x20c   : > { %950 = vxpose.xlu1.b32.end [16/16] (narrow) %v1366_v58, 8  ;;  %974 = vxpose.xlu0.b32.cont [8/16] (narrow) %v1378_v2, 8 }
 0x210   : > { %975 = vxpose.xlu0.b32.cont [9/16] (narrow) %v896_v5, 8 }
 0x214   : > { %976 = vxpose.xlu0.b32.cont [10/16] (narrow) %v1381_v4, 8 }
 0x218   : > { %977 = vxpose.xlu0.b32.cont [11/16] (narrow) %v906_v7, 8 }
 0x21c   : > { %978 = vxpose.xlu0.b32.cont [12/16] (narrow) %v1384_v6, 8 }
 0x220   : > { %979 = vxpose.xlu0.b32.cont [13/16] (narrow) %v916_v9, 8 }
 0x224   : > { %980 = vxpose.xlu0.b32.cont [14/16] (narrow) %v1387_v8, 8 }
 0x228   : > { %981 = vxpose.xlu0.b32.cont [15/16] (narrow) %v926_v11, 8 }
 0x22c   : > { %982 = vxpose.xlu0.b32.end [16/16] (narrow) %v1390_v10, 8 }
 0x250   : > { %v951_v15 = vpop.trf.xlu1 }
 0x251   : > { %v1019_v16 = vsel %vm1017_vm3, -1e+30, %v951_v15 }
 0x252   : > { %v1022_v17 = vsel %vm1021_vm2, %v1019_v16, -inf }
 0x253   : > { %1023 = vmax.xlane.f32.xlu1 %v1022_v17 }
 0x270   : > { %v983_v19 = vpop.trf.xlu0 }
 0x271   : > { %v1020_v20 = vsel %vm1018_vm4, -1e+30, %v983_v19 }
 0x272   : > { %v1025_v21 = vsel %vm1021_vm2, %v1020_v20, -inf }
 0x273   : > { %1026 = vmax.xlane.f32.xlu0 %v1025_v21 }
 0x2e0   : > { %v1024_v22 = vpop.xlane.xlu1 %1023 }
 0x2e1   : > { %v1028_v23 = vsub.f32 %v1019_v16, %v1024_v22 }
 0x2e3   : > { %v1030_v24 = vmul.f32 1.442695, %v1028_v23 }
 0x2e5   : > { %1510 = vpow2.f32 %v1030_v24 }
 0x2ef   : > { %v1511_v25 = vpop.eup %1510 }
 0x2f0   : > { %v1034_v26 = vsel %vm1021_vm2, %v1511_v25, 0.0 }
 0x2f1   : > { %1035 = vadd.xlane.f32.xlu1 %v1034_v26 }
 0x300   : > { %v1027_v27 = vpop.xlane.xlu0 %1026 }
 0x301   : > { %v1029_v28 = vsub.f32 %v1020_v20, %v1027_v27 }
 0x303   : > { %v1032_v29 = vmul.f32 1.442695, %v1029_v28 }
 0x305   : > { %1512 = vpow2.f32 %v1032_v29 }
 0x30f   : > { %v1513_v30 = vpop.eup %1512 }
 0x310   : > { %v1037_v31 = vsel %vm1021_vm2, %v1513_v30, 0.0 }
 0x311   : > { %1038 = vadd.xlane.f32.xlu1 %v1037_v31 }
 0x37e   : > { %v1036_v32 = vpop.xlane.xlu1 %1035 }
 0x37f   : > { %1514 = vrcp.f32 %v1036_v32 }
 0x389   : > { %v1515_v33 = vpop.eup %1514 }
 0x38a   : > { %v1042_v34 = vmul.f32 %v1515_v33, %v1511_v25 }
 0x38c   : > { %1044 = vst [vmem:[%s207_s6] sm:$0xf] %v1042_v34 }
 0x39e   : > { %v1039_v35 = vpop.xlane.xlu1 %1038 }
 0x39f   : > { %1516 = vrcp.f32 %v1039_v35 }
 0x3a9   : > { %v1517_v36 = vpop.eup %1516 }
 0x3aa   : > { %v1043_v37 = vmul.f32 %v1517_v36, %v1513_v30 }
 0x3ac   : > { %1045 = vst [vmem:[%s207_s6 + $0x4] sm:$0xf] %v1043_v37 }
 0x3ad   : > { %1531 = shalt.err (!%p1528_p3)
}
 0x3ae   : > { %s1532_s22 = scalar_lea.hbm %s1799_s11, 128  ;;  %s1536_s28 = scalar_lea.hbm %s1848_s4, 256 }
 0x3af   : > { %p1533_p4 = scmp.ne.s32.totalorder %s1799_s11, %s1532_s22  ;;  %p1537_p9 = scmp.lt.u32.totalorder %s1799_s11, %s1848_s4 }
 0x3b0   : > { %p1538_p10 = scmp.lt.u32.totalorder %s1536_s28, %s1532_s22  ;;  %p1540_p12 = scmp.lt.u32.totalorder %s1532_s22, %s1799_s11 }
 0x3b1   : > { %p1534_p7 = pnand %p1533_p4, %p1649_p5 }
 0x3b2   : > { %p1539_p11 = por %p1538_p10, %p1537_p9 }
 0x3b3   : > { %p1535_p8 = pneg %p1534_p7 }
 0x3b4   : > { %p1541_p13 = por %p1540_p12, %p1539_p11 }
 0x3b6   : > { %p1542_p0 = pnand %p1541_p13, %p1535_p8 }
 0x3b8   : > { %1545 = shalt.err (!%p1542_p0)
}
 0x3b9   : > { %s1584_s5 = smov 64   ;;  %s1585_s6 = smov 4  }
 0x3ba   : > { %1403 = dma.vmem_to_hbm [thread:$0]  (%p1649_p5), %s1801_s8, 128, %s1799_s11, %s1803_s12, %s1584_s5, %s1584_s5, %s1585_s6  }
 0x3bb PF: > { %p1409_p1 = scmp.ge.s32.totalorder %s1580_s18, 2  ;;  %s1075_s7 = sand.u32 1, %s1568_s15  }
 0x3bc   : > { %s1076_s9 = scalar_lea.sflag [#allocation3], %s1075_s7 }
 0x3bd   : > { %p1406_p2 = pnand %p1409_p1, %p1653_p6 }
 0x3bf   : > { %1563 = dma.done.wait (!%p1406_p2), %s1076_s9, 128  }
 0x3c0   : > { %1565 = vsyncadd (!%p1406_p2), %s1076_s9, 4294967168  ;;  %p14_p3 = scmp.ge.s32.totalorder %s1636_s21, 4   ;;  %s1851_s15 = smov %s1572_s16 }
 0x3c1   : > { %s1852_s16 = smov %s1576_s17  ;;  %s1853_s17 = smov %s1647_s24 }
 0x3c2   : > { %s1854_s18 = smov %s1636_s21  ;;  %16 = sbr.rel (!%p14_p3) target bundleno = 3 (0x3), region = 74 }
 0x3c9   :  { %1081 = vsyncpa [#allocation3], 1 }
 0x3ca   :  { %1083 = vsyncpa [#allocation3 + $0x1], 1 }

</bundles_post_ra>
